<compile_context>
chip_gen: v6e
topology: v6e:2x2x1
jax: 0.10.0
libtpu: 0.0.40
codegen_flags: <defaults>
</compile_context>

<pallas_src>
import numpy as np
import jax
import jax.numpy as jnp
from jax.experimental import pallas as pl
from jax.experimental.pallas import tpu as pltpu


# ----------------------------------------------------------------------------
# Pallas kernel: whole forward pass for one batch tile (B samples on lanes).
# ----------------------------------------------------------------------------
def connect4_kernel(x_ref, wq_ref, wf_ref, bf_ref, out_ref):
    # x_ref : (128, B) bf16  packed boards: rows [x_hi(42); x_hi(42); x_lo(42); 1; 1]
    # wq_ref: (4, 144, 128) bf16  per pool-quadrant folded conv matrix,
    #         cols [wc_hi(42) | wc_lo(42) | wc_hi(42) | bias_hi | bias_lo]
    # wf_ref: (144, 1) f32  fused fc weight (fc2_w @ fc1_w)^T
    # bf_ref: (1, 1)   f32  fused fc bias   (fc2_w @ fc1_b + fc2_b)
    # out_ref: (1, B)  f32
    x = x_ref[...]                                                   # (128, B) bf16

    # conv1(+bias) evaluated at the 4 positions of each 2x2 pool window, with a
    # running maximum (= maxpool) so no (576, B) intermediate is ever stored.
    # bf16 x bf16 -> f32 accumulate on the MXU; K=128 keeps each dot one-pass.
    m = jnp.dot(wq_ref[0], x, preferred_element_type=jnp.float32)    # (144, B) f32
    for q in range(1, 4):
        m = jnp.maximum(
            m, jnp.dot(wq_ref[q], x, preferred_element_type=jnp.float32))

    # relu after max == max after relu (relu monotone; bias is quadrant-invariant).
    h = jnp.maximum(m, 0.0)                                          # (144, B)

    # fused fc1+fc2 (no activation between them in the reference): weighted
    # sublane reduce on VPU/XLU -- kept off the MXU per review guidance.
    out_ref[...] = (jnp.sum(h * wf_ref[...], axis=0, keepdims=True)
                    + bf_ref[...])                                   # (1, B)


# ----------------------------------------------------------------------------
# Glue: fold conv (+bias) into packed bf16 hi/lo matrices; fuse fc1/fc2.
# ----------------------------------------------------------------------------
def _round_up(n, m):
    return ((n + m - 1) // m) * m


def _split_bf16(a):
    """a (f32) -> (hi, lo) bf16 pair with hi + lo ~= a to ~2^-17 relative."""
    hi = a.astype(jnp.bfloat16)
    lo = (a - hi.astype(jnp.float32)).astype(jnp.bfloat16)
    return hi, lo


def _conv_gather_tensor():
    """Static 0/1 tensor S[q, p, ki, kj, r]: board cell r feeds the conv output at
    spatial position (2*pi+di, 2*pj+dj) through kernel tap (ki, kj); q = 2x2
    pool-window offset (di, dj), p = pooled position (pi, pj)."""
    S = np.zeros((4, 9, 3, 3, 42), np.float32)
    for q in range(4):
        di, dj = divmod(q, 2)
        for p in range(9):
            pi, pj = divmod(p, 3)
            i, j = 2 * pi + di, 2 * pj + dj              # conv output position
            for ki in range(3):
                for kj in range(3):
                    bi, bj = i + ki - 1, j + kj - 1      # board cell (padding=1)
                    if 0 <= bi < 6 and 0 <= bj < 7:
                        S[q, p, ki, kj, bi * 7 + bj] = 1.0
    return S


def _build_conv_blocks(conv_w, conv_b):
    """conv_w (16,1,3,3), conv_b (16,) torch layout -> (4, 144, 128) bf16 packed
    matrix; rows within a quadrant ordered c*9 + p (matches the reference view)."""
    S = jnp.asarray(_conv_gather_tensor())                           # (4, 9, 3, 3, 42)
    W = jnp.einsum("qpklr,ckl->qcpr", S, conv_w[:, 0])               # (4, 16, 9, 42)
    wc = W.reshape(576, 42)                                          # rows q*144+c*9+p
    wc_hi, wc_lo = _split_bf16(wc)
    bias = jnp.tile(jnp.repeat(conv_b, 9), 4)                        # (576,) = conv_b[c]
    b_hi, b_lo = _split_bf16(bias)
    pack = jnp.concatenate(
        [wc_hi, wc_lo, wc_hi, b_hi.reshape(576, 1), b_lo.reshape(576, 1)], axis=1)
    return pack.reshape(4, 144, 128)                                 # bf16


def _pack_boards(x, n_pad):
    """x: (N, 1, 6, 7) f32 -> (128, n_pad) bf16 packed boards (batch on lanes)."""
    # NOTE: if the producer can supply boards already as (42, N), the transpose
    # below can be dropped (review item; minor).
    N = x.shape[0]
    xt = x.reshape(N, 42).T.astype(jnp.float32)                      # (42, N)
    xh, xl = _split_bf16(xt)
    ones = jnp.ones((2, N), jnp.bfloat16)                            # bias rows (hi, lo)
    xp = jnp.concatenate([xh, xh, xl, ones], axis=0)                 # (128, N)
    if n_pad != N:
        xp = jnp.pad(xp, ((0, 0), (0, n_pad - N)))                   # zero cols -> sliced off
    return xp


def connect4_forward(x, conv_w, conv_b, fc1_w, fc1_b, fc2_w, fc2_b, b_tile=2048):
    """x: (N, 1, 6, 7) float32; torch-layout parameters.  Returns (N, 1) float32."""
    N = x.shape[0]

    # Tile selection: >=128 lanes, cap for VMEM headroom on every generation, and
    # aim for >=2 grid tiles so ("parallel",) can use both TensorCores on v7x.
    b_tile = int(max(128, min(b_tile, 8192, _round_up((N + 1) // 2, 128))))
    n_pad = _round_up(max(N, 1), b_tile)
    num_tiles = n_pad // b_tile

    xp = _pack_boards(x, n_pad)                                      # (128, n_pad) bf16
    wq = _build_conv_blocks(conv_w, conv_b)                          # (4, 144, 128) bf16
    wf = (fc2_w @ fc1_w).reshape(144, 1).astype(jnp.float32)         # fused fc weight
    bf = (fc2_w @ fc1_b + fc2_b).reshape(1, 1).astype(jnp.float32)   # fused fc bias

    out = pl.pallas_call(
        connect4_kernel,
        out_shape=jax.ShapeDtypeStruct((1, n_pad), jnp.float32),
        grid=(num_tiles,),
        in_specs=[
            pl.BlockSpec((128, b_tile), lambda t: (0, t)),           # packed boards (batch tile)
            pl.BlockSpec((4, 144, 128), lambda t: (0, 0, 0)),        # weights: constant index,
            pl.BlockSpec((144, 1), lambda t: (0, 0)),                # VMEM-resident
            pl.BlockSpec((1, 1), lambda t: (0, 0)),
        ],
        out_specs=pl.BlockSpec((1, b_tile), lambda t: (0, t)),       # lane-dense output row
        compiler_params=pltpu.CompilerParams(
            dimension_semantics=("parallel",),                       # shard tiles across TCs (v7x)
            vmem_limit_bytes=32 * 1024 * 1024,                       # ample: working set <~12 MiB
        ),
    )(xp, wq, wf, bf)                                                # (1, n_pad)

    return out[0, :N].reshape(N, 1)


# ----------------------------------------------------------------------------
# Pure-JAX reference (independent path) for verification.
# ----------------------------------------------------------------------------
def reference_forward(x, conv_w, conv_b, fc1_w, fc1_b, fc2_w, fc2_b):
    y = jax.lax.conv_general_dilated(
        x, conv_w, window_strides=(1, 1), padding=((1, 1), (1, 1)),
        dimension_numbers=("NCHW", "OIHW", "NCHW"))
    y = jax.nn.relu(y + conv_b.reshape(1, 16, 1, 1))
    y = jax.lax.reduce_window(
        y, -jnp.inf, jax.lax.max,
        window_dimensions=(1, 1, 2, 2), window_strides=(1, 1, 2, 2),
        padding="VALID")                                             # (N, 16, 3, 3)
    y = y.reshape(y.shape[0], -1)                                    # (N, 144), (C,H,W) order
    y = y @ fc1_w.T + fc1_b
    y = y @ fc2_w.T + fc2_b
    return y


if __name__ == "__main__":
    key = jax.random.PRNGKey(0)
    kx, k1, k2, k3, k4, k5, k6, kx2 = jax.random.split(key, 8)

    # Deterministic synthetic parameters (torch layouts/shapes).
    conv_w = 0.1 * jax.random.normal(k1, (16, 1, 3, 3), dtype=jnp.float32)
    conv_b = 0.1 * jax.random.normal(k2, (16,), dtype=jnp.float32)
    fc1_w = 0.1 * jax.random.normal(k3, (32, 144), dtype=jnp.float32)
    fc1_b = 0.1 * jax.random.normal(k4, (32,), dtype=jnp.float32)
    fc2_w = 0.1 * jax.random.normal(k5, (1, 32), dtype=jnp.float32)
    fc2_b = 0.1 * jax.random.normal(k6, (1,), dtype=jnp.float32)

    # --- small batch, board-valued inputs (realistic Connect-4 domain) ---
    N = 2
    x = jax.random.randint(kx, (N, 1, 6, 7), -1, 2).astype(jnp.float32)
    out = connect4_forward(x, conv_w, conv_b, fc1_w, fc1_b, fc2_w, fc2_b)
    out = jax.block_until_ready(out)
    ref = reference_forward(x, conv_w, conv_b, fc1_w, fc1_b, fc2_w, fc2_b)
    assert out.shape == (N, 1), out.shape
    assert jnp.allclose(out, ref, rtol=1e-4, atol=1e-4), (out, ref)

    # --- larger, non-multiple batch with arbitrary float inputs: exercises the
    #     >=2-tile default path, padded tail, and the hi/lo precision packing ---
    N2 = 259
    x2 = jax.random.normal(kx2, (N2, 1, 6, 7), dtype=jnp.float32)
    out2 = connect4_forward(x2, conv_w, conv_b, fc1_w, fc1_b, fc2_w, fc2_b)
    out2 = jax.block_until_ready(out2)
    ref2 = reference_forward(x2, conv_w, conv_b, fc1_w, fc1_b, fc2_w, fc2_b)
    assert out2.shape == (N2, 1), out2.shape
    assert jnp.allclose(out2, ref2, rtol=1e-4, atol=1e-4), (
        float(jnp.abs(out2 - ref2).max()))

    # --- same batch with an explicit small tile: multi-tile (3 steps) grid path ---
    out3 = connect4_forward(x2, conv_w, conv_b, fc1_w, fc1_b, fc2_w, fc2_b,
                            b_tile=128)
    out3 = jax.block_until_ready(out3)
    assert jnp.allclose(out3, ref2, rtol=1e-4, atol=1e-4), (
        float(jnp.abs(out3 - ref2).max()))

    print("KERNEL_OK")
</pallas_src>

<mosaic_0001>
module attributes {stable_mosaic.version = 11 : i64} {
  func.func @connect4_kernel(%arg0: i32, %arg1: memref<128x128xbf16, #tpu.memory_space<vmem>>, %arg2: memref<4x144x128xbf16, #tpu.memory_space<vmem>>, %arg3: memref<144x1xf32, #tpu.memory_space<vmem>>, %arg4: memref<1x1xf32, #tpu.memory_space<vmem>>, %arg5: memref<1x128xf32, #tpu.memory_space<vmem>>) attributes {dimension_semantics = [#tpu.dimension_semantics<parallel>], iteration_bounds = array<i64: 1>, scalar_prefetch = 0 : i64, scratch_operands = 0 : i64, tpu.core_type = #tpu.core_type<tc>, window_params = [{transform_indices = @transform_0, window_bounds = array<i64: 128, 128>}, {pipeline_mode = #tpu.pipeline_mode<synchronous>, transform_indices = @transform_1, window_bounds = array<i64: 4, 144, 128>}, {pipeline_mode = #tpu.pipeline_mode<synchronous>, transform_indices = @transform_2, window_bounds = array<i64: 144, 1>}, {pipeline_mode = #tpu.pipeline_mode<synchronous>, transform_indices = @transform_3, window_bounds = array<i64: 1, 1>}, {transform_indices = @transform_4, window_bounds = array<i64: 1, 128>}]} {
    %c0 = arith.constant 0 : index
    %c0_0 = arith.constant 0 : index
    %0 = vector.load %arg1[%c0, %c0_0] : memref<128x128xbf16, #tpu.memory_space<vmem>>, vector<128x128xbf16>
    %c0_1 = arith.constant 0 : index
    %c0_2 = arith.constant 0 : index
    %c0_3 = arith.constant 0 : index
    %1 = vector.load %arg2[%c0_1, %c0_2, %c0_3] : memref<4x144x128xbf16, #tpu.memory_space<vmem>>, vector<1x144x128xbf16>
    %2 = vector.shape_cast %1 : vector<1x144x128xbf16> to vector<144x128xbf16>
    %cst = arith.constant dense<0.000000e+00> : vector<144x128xf32>
    %3 = tpu.matmul %2, %0, %cst {dimension_numbers = #tpu.dot_dimension_numbers<[1], [0], [0], [1], [0, 0, 1, 1], [], []>} : vector<144x128xbf16>, vector<128x128xbf16>, vector<144x128xf32> -> vector<144x128xf32>
    %c1 = arith.constant 1 : index
    %c0_4 = arith.constant 0 : index
    %c0_5 = arith.constant 0 : index
    %4 = vector.load %arg2[%c1, %c0_4, %c0_5] : memref<4x144x128xbf16, #tpu.memory_space<vmem>>, vector<1x144x128xbf16>
    %5 = vector.shape_cast %4 : vector<1x144x128xbf16> to vector<144x128xbf16>
    %cst_6 = arith.constant dense<0.000000e+00> : vector<144x128xf32>
    %6 = tpu.matmul %5, %0, %cst_6 {dimension_numbers = #tpu.dot_dimension_numbers<[1], [0], [0], [1], [0, 0, 1, 1], [], []>} : vector<144x128xbf16>, vector<128x128xbf16>, vector<144x128xf32> -> vector<144x128xf32>
    %7 = arith.maximumf %3, %6 : vector<144x128xf32>
    %c2 = arith.constant 2 : index
    %c0_7 = arith.constant 0 : index
    %c0_8 = arith.constant 0 : index
    %8 = vector.load %arg2[%c2, %c0_7, %c0_8] : memref<4x144x128xbf16, #tpu.memory_space<vmem>>, vector<1x144x128xbf16>
    %9 = vector.shape_cast %8 : vector<1x144x128xbf16> to vector<144x128xbf16>
    %cst_9 = arith.constant dense<0.000000e+00> : vector<144x128xf32>
    %10 = tpu.matmul %9, %0, %cst_9 {dimension_numbers = #tpu.dot_dimension_numbers<[1], [0], [0], [1], [0, 0, 1, 1], [], []>} : vector<144x128xbf16>, vector<128x128xbf16>, vector<144x128xf32> -> vector<144x128xf32>
    %11 = arith.maximumf %7, %10 : vector<144x128xf32>
    %c3 = arith.constant 3 : index
    %c0_10 = arith.constant 0 : index
    %c0_11 = arith.constant 0 : index
    %12 = vector.load %arg2[%c3, %c0_10, %c0_11] : memref<4x144x128xbf16, #tpu.memory_space<vmem>>, vector<1x144x128xbf16>
    %13 = vector.shape_cast %12 : vector<1x144x128xbf16> to vector<144x128xbf16>
    %cst_12 = arith.constant dense<0.000000e+00> : vector<144x128xf32>
    %14 = tpu.matmul %13, %0, %cst_12 {dimension_numbers = #tpu.dot_dimension_numbers<[1], [0], [0], [1], [0, 0, 1, 1], [], []>} : vector<144x128xbf16>, vector<128x128xbf16>, vector<144x128xf32> -> vector<144x128xf32>
    %15 = arith.maximumf %11, %14 : vector<144x128xf32>
    %cst_13 = arith.constant 0.000000e+00 : f32
    %16 = vector.broadcast %cst_13 : f32 to vector<144x128xf32>
    %17 = arith.maximumf %15, %16 : vector<144x128xf32>
    %c0_14 = arith.constant 0 : index
    %c0_15 = arith.constant 0 : index
    %18 = vector.load %arg3[%c0_14, %c0_15] : memref<144x1xf32, #tpu.memory_space<vmem>>, vector<144x1xf32>
    %19 = vector.broadcast %18 : vector<144x1xf32> to vector<144x128xf32>
    %20 = arith.mulf %17, %19 : vector<144x128xf32>
    %cst_16 = arith.constant dense<0.000000e+00> : vector<128xf32>
    %21 = vector.multi_reduction <add>, %20, %cst_16 [0] : vector<144x128xf32> to vector<128xf32>
    %22 = vector.shape_cast %21 : vector<128xf32> to vector<1x128xf32>
    %c0_17 = arith.constant 0 : index
    %c0_18 = arith.constant 0 : index
    %23 = vector.load %arg4[%c0_17, %c0_18] : memref<1x1xf32, #tpu.memory_space<vmem>>, vector<1x1xf32>
    %24 = vector.broadcast %23 : vector<1x1xf32> to vector<1x128xf32>
    %25 = arith.addf %22, %24 : vector<1x128xf32>
    %c0_19 = arith.constant 0 : index
    %c0_20 = arith.constant 0 : index
    %26 = vector.load %arg5[%c0_19, %c0_20] : memref<1x128xf32, #tpu.memory_space<vmem>>, vector<1x128xf32>
    tpu.vector_store %arg5[%c0_19, %c0_20], %25 {strides = array<i32>} : memref<1x128xf32, #tpu.memory_space<vmem>>, vector<1x128xf32>,
    return
  }
  func.func @transform_0(%arg0: i32) -> (i32, i32) {
    %c0_i32 = arith.constant 0 : i32
    %c0_i32_0 = arith.constant 0 : i32
    return %c0_i32, %arg0 : i32, i32
  }
  func.func @transform_1(%arg0: i32) -> (i32, i32, i32) {
    %c0_i32 = arith.constant 0 : i32
    %c0_i32_0 = arith.constant 0 : i32
    %c0_i32_1 = arith.constant 0 : i32
    %c0_i32_2 = arith.constant 0 : i32
    return %c0_i32, %c0_i32_0, %c0_i32_1 : i32, i32, i32
  }
  func.func @transform_2(%arg0: i32) -> (i32, i32) {
    %c0_i32 = arith.constant 0 : i32
    %c0_i32_0 = arith.constant 0 : i32
    %c0_i32_1 = arith.constant 0 : i32
    return %c0_i32, %c0_i32_0 : i32, i32
  }
  func.func @transform_3(%arg0: i32) -> (i32, i32) {
    %c0_i32 = arith.constant 0 : i32
    %c0_i32_0 = arith.constant 0 : i32
    %c0_i32_1 = arith.constant 0 : i32
    return %c0_i32, %c0_i32_0 : i32, i32
  }
  func.func @transform_4(%arg0: i32) -> (i32, i32) {
    %c0_i32 = arith.constant 0 : i32
    %c0_i32_0 = arith.constant 0 : i32
    return %c0_i32, %arg0 : i32, i32
  }
}

</mosaic_0001>

<bundles_post_ra>
// kernel: tpu_custom_call.1
= control target key start
LH: loop header
LB: loop body
LE: loop exit
PB: predicated region body
PF: predicated region fallthrough
CT: control target
= control target key end

     0   :  { %s1884_s0 = inlined_call_operand.vmem [shape: bf16[128,128], index: 0, kind: input, shape index: {}]   ;;  %s1885_s1 = inlined_call_operand.hbm [shape: bf16[4,144,128], index: 1, kind: input, shape index: {}]   ;;  %s1886_s2 = inlined_call_operand.vmem [shape: f32[144,1], index: 2, kind: input, shape index: {}]   ;;  %s1887_s3 = inlined_call_operand.<no memory space> [shape: f32[1,1], index: 3, kind: input, shape index: {}]   ;;  %s1888_s4 = inlined_call_operand.hbm [shape: f32[1,128], index: 4, kind: output, shape index: {}]  }
   0x1   :  { %v9_v0 = vstv %s1887_s3 }
   0x2   :  { %10 = vst [vmem:[#allocation2] sm:$0x1] %v9_v0 }
   0x3   :  { %11 = vsyncpa [#allocation4], 0 }
   0x4   :  { %12 = vsyncpa [#allocation5], 0  ;;  %s1475_s17 = smov [#allocation3]  }
   0x5   :  { %s20_s18 = sshll.u32 %s1475_s17, 4  ;;  %s21_s18 = int_to_ptr.vmem [resolvable:$true] %s20_s18 }
   0x6   :  { %s1439_s19 = scalar_lea.vmem %s21_s18, 4608  ;;  %p1444_p1 = scmp.lt.s32.totalorder %s21_s18, %s21_s18 }
   0x7   :  { %p1440_p0 = scmp.ne.s32.totalorder %s21_s18, %s1439_s19  ;;  %p1445_p2 = scmp.lt.s32.totalorder %s1439_s19, %s1439_s19 }
   0x9   :  { %p1446_p3 = por %p1445_p2, %p1444_p1 }
   0xb   :  { %p1447_p4 = pnand %p1446_p3, %p1440_p0 }
   0xd   :  { %1450 = shalt.err (!%p1447_p4)
}
   0xe   :  { %s1476_s20 = smov 64   ;;  %s1477_s21 = smov 4  }
   0xf   :  { %26 = dma.hbm_to_vmem [thread:$0]  %s1885_s1, 4608, %s21_s18, [#allocation4], %s1476_s20, %s1476_s20, %s1477_s21  }
  0x10   :  { %1471 = dma.done.wait [#allocation4], 4608  }
  0x11   :  { %1472 = vsyncadd [#allocation4], 4294962688  ;;  %v1478_v1 = vmov 0.0   ;;  %vm1479_vm0 = vmmov 0   ;;  %v1387_v2 = vld [vmem:[%s1884_s0 + $0x38] sm:$0xff]   ;;  %v1388_v3 = vld [vmem:[%s1884_s0 + $0x30] sm:$0xff]  }
  0x12   :  { %1170 = vmatprep.subr.bf16.mxu0 %v1478_v1  ;;  %1222 = vmatprep.subr.bf16.mxu1 %v1478_v1  ;;  %v1389_v4 = vld [vmem:[%s1884_s0 + $0x28] sm:$0xff]   ;;  %v1390_v5 = vld [vmem:[%s1884_s0 + $0x20] sm:$0xff]   ;;  %v1540_v6 = vld [vmem:[%s1884_s0 + $0x18] sm:$0xff]   ;;  %v1480_v18 = vmov 0  }
  0x13   :  { %1186 = vmatprep.mubr.msk.bf16.mxu0 %vm1479_vm0, %v1478_v1  ;;  %1238 = vmatprep.mubr.msk.bf16.mxu1 %vm1479_vm0, %v1478_v1  ;;  %v1549_v7 = vld [vmem:[%s1884_s0 + $0x10] sm:$0xff]   ;;  %v1558_v8 = vld [vmem:[%s1884_s0 + $0x8] sm:$0xff]   ;;  %v1567_v9 = vld [vmem:[%s1884_s0] sm:$0xff]  }
  0x14   :  { %1171 = vmatpush3.bf16.msra.mxu0 %v1387_v2  ;;  %1223 = vmatpush3.bf16.msra.mxu1 %v1387_v2  ;;  %v1395_v10 = vld [vmem:[#allocation3] sm:$0xff]   ;;  %v1396_v11 = vld [vmem:[#allocation3 + $0x48] sm:$0xff]   ;;  %v1398_v13 = vld [vmem:[#allocation3 + $0x50] sm:$0xff]  }
  0x15   :  { %1172 = vmatprep.subr.bf16.mxu0 %v1478_v1  ;;  %1224 = vmatprep.subr.bf16.mxu1 %v1478_v1  ;;  %v1397_v12 = vld [vmem:[#allocation3 + $0x8] sm:$0xff]   ;;  %v882_v14 = vld [vmem:[%s1886_s2] sm:$0xff]  ;;  %v1399_v16 = vld [vmem:[#allocation3 + $0x10] sm:$0xff]  }
  0x16   :  { %v884_v15 = vld [vmem:[%s1886_s2 + $0x10] sm:$0xff]  ;;  %v1400_v17 = vld [vmem:[#allocation3 + $0x58] sm:$0xff]   ;;  %1385 = vset.pattern.permute.xlu0 %v1480_v18  ;;  %1386 = vset.pattern.permute.xlu1 %v1480_v18  ;;  %v883_v19 = vld [vmem:[%s1886_s2 + $0x8] sm:$0xff] }
  0x17   :  { %902 = vperm.xlu0 %1385, %v882_v14   ;;  %912 = vperm.xlu1 %1386, %v884_v15   ;;  %v885_v20 = vld [vmem:[%s1886_s2 + $0x18] sm:$0xff]  ;;  %v1402_v22 = vld [vmem:[#allocation3 + $0x60] sm:$0xff]   ;;  %v1404_v26 = vld [vmem:[#allocation3 + $0x68] sm:$0xff]  }
  0x18   :  { %1173 = vmatpush3.bf16.msra.mxu0 %v1388_v3  ;;  %1225 = vmatpush3.bf16.msra.mxu1 %v1388_v3  ;;  %v1401_v21 = vld [vmem:[#allocation3 + $0x18] sm:$0xff]   ;;  %v887_v24 = vld [vmem:[%s1886_s2 + $0x28] sm:$0xff]  ;;  %v888_v27 = vld [vmem:[%s1886_s2 + $0x30] sm:$0xff] }
  0x19   :  { %1174 = vmatprep.subr.bf16.mxu0 %v1478_v1  ;;  %1226 = vmatprep.subr.bf16.mxu1 %v1478_v1  ;;  %v886_v23 = vld [vmem:[%s1886_s2 + $0x20] sm:$0xff]  ;;  %v889_v28 = vld [vmem:[%s1886_s2 + $0x38] sm:$0xff]  ;;  %v891_v30 = vld [vmem:[%s1886_s2 + $0x48] sm:$0xff] }
  0x1a   :  { %v1403_v25 = vld [vmem:[#allocation3 + $0x20] sm:$0xff]   ;;  %v1405_v31 = vld [vmem:[#allocation3 + $0x28] sm:$0xff]   ;;  %v1406_v32 = vld [vmem:[#allocation3 + $0x70] sm:$0xff]  }
  0x1b   :  { %907 = vperm.xlu0 %1385, %v883_v19   ;;  %917 = vperm.xlu1 %1386, %v885_v20   ;;  %v890_v29 = vld [vmem:[%s1886_s2 + $0x40] sm:$0xff]  ;;  %v892_v33 = vld [vmem:[%s1886_s2 + $0x50] sm:$0xff]  ;;  %v893_v34 = vld [vmem:[%s1886_s2 + $0x58] sm:$0xff] }
  0x1c   :  { %1175 = vmatpush3.bf16.msra.mxu0 %v1389_v4  ;;  %1227 = vmatpush3.bf16.msra.mxu1 %v1389_v4  ;;  %v894_v35 = vld [vmem:[%s1886_s2 + $0x60] sm:$0xff]  ;;  %v895_v36 = vld [vmem:[%s1886_s2 + $0x68] sm:$0xff]  ;;  %v1407_v37 = vld [vmem:[#allocation3 + $0x30] sm:$0xff]  }
  0x1d   :  { %1176 = vmatprep.subr.bf16.mxu0 %v1478_v1  ;;  %1228 = vmatprep.subr.bf16.mxu1 %v1478_v1  ;;  %v1408_v38 = vld [vmem:[#allocation3 + $0x78] sm:$0xff]   ;;  %v896_v39 = vld [vmem:[%s1886_s2 + $0x70] sm:$0xff]  ;;  %v899_v42 = vld [vmem:[%s1886_s2 + $0x88] sm:$0xff] }
  0x1e   :  { %v897_v40 = vld [vmem:[%s1886_s2 + $0x78] sm:$0xff]  ;;  %v898_v41 = vld [vmem:[%s1886_s2 + $0x80] sm:$0xff]  ;;  %v1412_v47 = vld [vmem:[#allocation3 + $0x88] sm:$0xff]   ;;  %s1481_s2 = smov [#allocation6]  }
  0x1f   :  { %922 = vperm.xlu0 %1385, %v886_v23   ;;  %927 = vperm.xlu1 %1386, %v887_v24   ;;  %v1409_v43 = vld [vmem:[#allocation3 + $0x38] sm:$0xff]   ;;  %v1410_v44 = vld [vmem:[#allocation3 + $0x80] sm:$0xff]   ;;  %v1413_v48 = vld [vmem:[#allocation3 + $0x90] sm:$0xff]   ;;  %s1049_s18 = sshll.u32 %s1481_s2, 4  ;;  %s1050_s18 = int_to_ptr.vmem [resolvable:$true] %s1049_s18 }
  0x20   :  { %1177 = vmatpush3.bf16.msra.mxu0 %v1390_v5  ;;  %1229 = vmatpush3.bf16.msra.mxu1 %v1390_v5  ;;  %v1031_v45 = vld [vmem:[#allocation2] sm:$0x1]  ;;  %v1411_v46 = vld [vmem:[#allocation3 + $0x40] sm:$0xff]   ;;  %v1418_v53 = vld [vmem:[#allocation3 + $0xe8] sm:$0xff]   ;;  %s1451_s19 = scalar_lea.vmem %s1050_s18, 16  ;;  %s1455_s20 = scalar_lea.vmem %s1050_s18, 32 }
  0x21   :  { %1178 = vmatprep.subr.bf16.mxu0 %v1478_v1  ;;  %1230 = vmatprep.subr.bf16.mxu1 %v1478_v1  ;;  %v1414_v49 = vld [vmem:[#allocation3 + $0xd8] sm:$0xff]   ;;  %v1416_v51 = vld [vmem:[#allocation3 + $0xe0] sm:$0xff]   ;;  %v1419_v54 = vld [vmem:[#allocation3 + $0xa8] sm:$0xff]   ;;  %p1452_p5 = scmp.ne.s32.totalorder %s1050_s18, %s1451_s19  ;;  %p1456_p6 = scmp.lt.s32.totalorder %s1050_s18, %s1050_s18 }
  0x22   :  { %v1415_v50 = vld [vmem:[#allocation3 + $0x98] sm:$0xff]   ;;  %v1417_v52 = vld [vmem:[#allocation3 + $0xa0] sm:$0xff]   ;;  %v1420_v55 = vld [vmem:[#allocation3 + $0xf0] sm:$0xff]   ;;  %p1457_p7 = scmp.lt.s32.totalorder %s1455_s20, %s1451_s19 }
  0x23   :  { %932 = vperm.xlu0 %1385, %v888_v27   ;;  %937 = vperm.xlu1 %1386, %v889_v28   ;;  %v1421_v56 = vld [vmem:[#allocation3 + $0xb0] sm:$0xff]   ;;  %v1422_v57 = vld [vmem:[#allocation3 + $0xf8] sm:$0xff]   ;;  %v1424_v59 = vld [vmem:[#allocation3 + $0x100] sm:$0xff]  }
  0x24   :  { %1179 = vmatpush3.bf16.msra.mxu0 %v1540_v6  ;;  %1231 = vmatpush3.bf16.msra.mxu1 %v1540_v6  ;;  %v1423_v58 = vld [vmem:[#allocation3 + $0xb8] sm:$0xff]   ;;  %v1425_v60 = vld [vmem:[#allocation3 + $0xc0] sm:$0xff]   ;;  %v1426_v61 = vld [vmem:[#allocation3 + $0x108] sm:$0xff]   ;;  %p1458_p8 = por %p1457_p7, %p1456_p6 }
  0x25   :  { %1180 = vmatprep.subr.bf16.mxu0 %v1478_v1  ;;  %1232 = vmatprep.subr.bf16.mxu1 %v1478_v1  ;;  %v1427_v62 = vld [vmem:[#allocation3 + $0xc8] sm:$0xff]   ;;  %v1428_v63 = vld [vmem:[#allocation3 + $0x110] sm:$0xff]  }
  0x26   :  { %v1429_v0 = vld [vmem:[#allocation3 + $0xd0] sm:$0xff]   ;;  %p1459_p9 = pnand %p1458_p8, %p1452_p5 }
  0x27   :  { %942 = vperm.xlu0 %1385, %v890_v29   ;;  %947 = vperm.xlu1 %1386, %v891_v30  }
  0x28   :  { %1181 = vmatpush3.bf16.msra.mxu0 %v1549_v7  ;;  %1233 = vmatpush3.bf16.msra.mxu1 %v1549_v7 }
  0x29   :  { %1182 = vmatprep.subr.bf16.mxu0 %v1478_v1  ;;  %1234 = vmatprep.subr.bf16.mxu1 %v1478_v1 }
  0x2b   :  { %952 = vperm.xlu0 %1385, %v892_v33   ;;  %957 = vperm.xlu1 %1386, %v893_v34  }
  0x2c   :  { %1183 = vmatpush3.bf16.msra.mxu0 %v1558_v8  ;;  %1235 = vmatpush3.bf16.msra.mxu1 %v1558_v8 }
  0x2d   :  { %1184 = vmatprep.subr.bf16.mxu0 %v1478_v1  ;;  %1236 = vmatprep.subr.bf16.mxu1 %v1478_v1 }
  0x2f   :  { %962 = vperm.xlu0 %1385, %v894_v35   ;;  %967 = vperm.xlu1 %1386, %v895_v36  }
  0x30   :  { %1185 = vmatpush3.bf16.msra.mxu0 %v1567_v9  ;;  %1237 = vmatpush3.bf16.msra.mxu1 %v1567_v9 }
  0x31   :  { %1274 = vmatprep.subr.bf16.mxu0 %v1478_v1  ;;  %1326 = vmatprep.subr.bf16.mxu1 %v1478_v1 }
  0x33   :  { %1187 = vmatmul.mubr.bf16.vlgmr.msra.gmra.mxu0 %v1395_v10  ;;  %1239 = vmatmul.mubr.bf16.vlgmr.msra.gmra.mxu1 %v1396_v11 }
  0x34   :  { %1275 = vmatpush3.bf16.msra.mxu0 %v1387_v2  ;;  %1327 = vmatpush3.bf16.msra.mxu1 %v1387_v2  ;;  %v1430_v2 = vld [vmem:[#allocation3 + $0x118] sm:$0xff]  }
  0x35   :  { %1190 = vmatprep.mubr.msk.bf16.mxu0 %vm1479_vm0, %v1478_v1  ;;  %1242 = vmatprep.mubr.msk.bf16.mxu1 %vm1479_vm0, %v1478_v1 }
  0x36   :  { %1276 = vmatprep.subr.bf16.mxu0 %v1478_v1  ;;  %1328 = vmatprep.subr.bf16.mxu1 %v1478_v1 }
  0x37   :  { %972 = vperm.xlu0 %1385, %v896_v39   ;;  %977 = vperm.xlu1 %1386, %v897_v40  }
  0x38   :  { %1277 = vmatpush3.bf16.msra.mxu0 %v1388_v3  ;;  %1329 = vmatpush3.bf16.msra.mxu1 %v1388_v3 }
  0x39   :  { %1278 = vmatprep.subr.bf16.mxu0 %v1478_v1  ;;  %1330 = vmatprep.subr.bf16.mxu1 %v1478_v1 }
  0x3b   :  { %1191 = vmatmul.mubr.bf16.gmra.mxu0 %v1397_v12  ;;  %1243 = vmatmul.mubr.bf16.gmra.mxu1 %v1398_v13 }
  0x3c   :  { %1194 = vmatprep.mubr.msk.bf16.mxu0 %vm1479_vm0, %v1478_v1  ;;  %1246 = vmatprep.mubr.msk.bf16.mxu1 %vm1479_vm0, %v1478_v1 }
  0x3d   :  { %1279 = vmatpush3.bf16.msra.mxu0 %v1389_v4  ;;  %1331 = vmatpush3.bf16.msra.mxu1 %v1389_v4 }
  0x3e   :  { %1280 = vmatprep.subr.bf16.mxu0 %v1478_v1  ;;  %1332 = vmatprep.subr.bf16.mxu1 %v1478_v1 }
  0x3f   :  { %982 = vperm.xlu0 %1385, %v898_v41   ;;  %987 = vperm.xlu1 %1386, %v899_v42  }
  0x41   :  { %1281 = vmatpush3.bf16.msra.mxu0 %v1390_v5  ;;  %1333 = vmatpush3.bf16.msra.mxu1 %v1390_v5 }
  0x42   :  { %1282 = vmatprep.subr.bf16.mxu0 %v1478_v1  ;;  %1334 = vmatprep.subr.bf16.mxu1 %v1478_v1 }
  0x43   :  { %1195 = vmatmul.mubr.bf16.gmra.mxu0 %v1399_v16  ;;  %1247 = vmatmul.mubr.bf16.gmra.mxu1 %v1400_v17 }
  0x44   :  { %1198 = vmatprep.mubr.msk.bf16.mxu0 %vm1479_vm0, %v1478_v1  ;;  %1250 = vmatprep.mubr.msk.bf16.mxu1 %vm1479_vm0, %v1478_v1 }
  0x45   :  { %1283 = vmatpush3.bf16.msra.mxu0 %v1540_v6  ;;  %1335 = vmatpush3.bf16.msra.mxu1 %v1540_v6 }
  0x46   :  { %1284 = vmatprep.subr.bf16.mxu0 %v1478_v1  ;;  %1336 = vmatprep.subr.bf16.mxu1 %v1478_v1 }
  0x47   :  { %1034 = vperm.xlu0 %1385, %v1031_v45  }
  0x49   :  { %1285 = vmatpush3.bf16.msra.mxu0 %v1549_v7  ;;  %1337 = vmatpush3.bf16.msra.mxu1 %v1549_v7 }
  0x4a   :  { %1286 = vmatprep.subr.bf16.mxu0 %v1478_v1  ;;  %1338 = vmatprep.subr.bf16.mxu1 %v1478_v1 }
  0x4b   :  { %1199 = vmatmul.mubr.bf16.gmra.mxu0 %v1401_v21  ;;  %1251 = vmatmul.mubr.bf16.gmra.mxu1 %v1402_v22 }
  0x4c   :  { %1202 = vmatprep.mubr.msk.bf16.mxu0 %vm1479_vm0, %v1478_v1  ;;  %1254 = vmatprep.mubr.msk.bf16.mxu1 %vm1479_vm0, %v1478_v1 }
  0x4d   :  { %1287 = vmatpush3.bf16.msra.mxu0 %v1558_v8  ;;  %1339 = vmatpush3.bf16.msra.mxu1 %v1558_v8 }
  0x4e   :  { %1288 = vmatprep.subr.bf16.mxu0 %v1478_v1  ;;  %1340 = vmatprep.subr.bf16.mxu1 %v1478_v1 }
  0x51   :  { %1289 = vmatpush3.bf16.msra.mxu0 %v1567_v9  ;;  %1341 = vmatpush3.bf16.msra.mxu1 %v1567_v9 }
  0x53   :  { %1203 = vmatmul.mubr.bf16.gmra.mxu0 %v1403_v25  ;;  %1255 = vmatmul.mubr.bf16.gmra.mxu1 %v1404_v26 }
  0x54   :  { %1206 = vmatprep.mubr.msk.bf16.mxu0 %vm1479_vm0, %v1478_v1  ;;  %1258 = vmatprep.mubr.msk.bf16.mxu1 %vm1479_vm0, %v1478_v1 }
  0x5b   :  { %1207 = vmatmul.mubr.bf16.gmra.mxu0 %v1405_v31  ;;  %1259 = vmatmul.mubr.bf16.gmra.mxu1 %v1406_v32 }
  0x5c   :  { %1210 = vmatprep.mubr.msk.bf16.mxu0 %vm1479_vm0, %v1478_v1  ;;  %1262 = vmatprep.mubr.msk.bf16.mxu1 %vm1479_vm0, %v1478_v1 }
  0x63   :  { %1211 = vmatmul.mubr.bf16.gmra.mxu0 %v1407_v37  ;;  %1263 = vmatmul.mubr.bf16.gmra.mxu1 %v1408_v38 }
  0x64   :  { %1214 = vmatprep.mubr.msk.bf16.mxu0 %vm1479_vm0, %v1478_v1  ;;  %1266 = vmatprep.mubr.msk.bf16.mxu1 %vm1479_vm0, %v1478_v1 }
  0x6b   :  { %1215 = vmatmul.mubr.bf16.gmra.mxu0 %v1409_v43  ;;  %1267 = vmatmul.mubr.bf16.gmra.mxu1 %v1410_v44 }
  0x6c   :  { %1218 = vmatprep.mubr.msk.bf16.mxu0 %vm1479_vm0, %v1478_v1  ;;  %1270 = vmatprep.mubr.msk.bf16.mxu1 %vm1479_vm0, %v1478_v1 }
  0x73   :  { %1219 = vmatmul.mubr.bf16.gmra.mxu0 %v1411_v46  ;;  %1271 = vmatmul.mubr.bf16.gmra.mxu1 %v1412_v47 }
  0x74   :  { %1290 = vmatprep.mubr.msk.bf16.mxu0 %vm1479_vm0, %v1478_v1  ;;  %1342 = vmatprep.mubr.msk.bf16.mxu1 %vm1479_vm0, %v1478_v1 }
  0x7b   :  { %1291 = vmatmul.mubr.bf16.vlgmr.msra.gmra.mxu0 %v1413_v48  ;;  %1343 = vmatmul.mubr.bf16.vlgmr.msra.gmra.mxu1 %v1414_v49 }
  0x7c   :  { %1294 = vmatprep.mubr.msk.bf16.mxu0 %vm1479_vm0, %v1478_v1  ;;  %1346 = vmatprep.mubr.msk.bf16.mxu1 %vm1479_vm0, %v1478_v1 }
  0x83   :  { %1295 = vmatmul.mubr.bf16.gmra.mxu0 %v1415_v50  ;;  %1347 = vmatmul.mubr.bf16.gmra.mxu1 %v1416_v51 }
  0x84   :  { %1298 = vmatprep.mubr.msk.bf16.mxu0 %vm1479_vm0, %v1478_v1  ;;  %1350 = vmatprep.mubr.msk.bf16.mxu1 %vm1479_vm0, %v1478_v1 }
  0x8b   :  { %1299 = vmatmul.mubr.bf16.gmra.mxu0 %v1417_v52  ;;  %1351 = vmatmul.mubr.bf16.gmra.mxu1 %v1418_v53 }
  0x8c   :  { %1302 = vmatprep.mubr.msk.bf16.mxu0 %vm1479_vm0, %v1478_v1  ;;  %1354 = vmatprep.mubr.msk.bf16.mxu1 %vm1479_vm0, %v1478_v1 }
  0x93   :  { %1303 = vmatmul.mubr.bf16.gmra.mxu0 %v1419_v54  ;;  %1355 = vmatmul.mubr.bf16.gmra.mxu1 %v1420_v55 }
  0x94   :  { %1306 = vmatprep.mubr.msk.bf16.mxu0 %vm1479_vm0, %v1478_v1  ;;  %1358 = vmatprep.mubr.msk.bf16.mxu1 %vm1479_vm0, %v1478_v1 }
  0x9b   :  { %1307 = vmatmul.mubr.bf16.gmra.mxu0 %v1421_v56  ;;  %1359 = vmatmul.mubr.bf16.gmra.mxu1 %v1422_v57 }
  0x9c   :  { %1310 = vmatprep.mubr.msk.bf16.mxu0 %vm1479_vm0, %v1478_v1  ;;  %1362 = vmatprep.mubr.msk.bf16.mxu1 %vm1479_vm0, %v1478_v1 }
  0xa3   :  { %1311 = vmatmul.mubr.bf16.gmra.mxu0 %v1423_v58  ;;  %1363 = vmatmul.mubr.bf16.gmra.mxu1 %v1424_v59 }
  0xa4   :  { %1314 = vmatprep.mubr.msk.bf16.mxu0 %vm1479_vm0, %v1478_v1  ;;  %1366 = vmatprep.mubr.msk.bf16.mxu1 %vm1479_vm0, %v1478_v1 }
  0xab   :  { %1315 = vmatmul.mubr.bf16.gmra.mxu0 %v1425_v60  ;;  %1367 = vmatmul.mubr.bf16.gmra.mxu1 %v1426_v61 }
  0xac   :  { %1318 = vmatprep.mubr.msk.bf16.mxu0 %vm1479_vm0, %v1478_v1  ;;  %1370 = vmatprep.mubr.msk.bf16.mxu1 %vm1479_vm0, %v1478_v1 }
  0xb3   :  { %1319 = vmatmul.mubr.bf16.gmra.mxu0 %v1427_v62  ;;  %1371 = vmatmul.mubr.bf16.gmra.mxu1 %v1428_v63 }
  0xb4   :  { %1322 = vmatprep.mubr.msk.bf16.mxu0 %vm1479_vm0, %v1478_v1  ;;  %1374 = vmatprep.mubr.msk.bf16.mxu1 %vm1479_vm0, %v1478_v1 }
  0xbb   :  { %1323 = vmatmul.mubr.bf16.gmra.mxu0 %v1429_v0  ;;  %1375 = vmatmul.mubr.bf16.gmra.mxu1 %v1430_v2 }
  0xf3   :  { %v1719_v3 = vpop.f32.mrf.mxu0  ;;  %v1721_v4 = vpop.f32.mrf.mxu1 }
  0xf4   :  { %v454_v5 = vmax.f32 %v1719_v3, %v1721_v4 }
  0xf5   :  { %v1188_v6 = vpop.f32.mrf.mxu0  ;;  %v1240_v7 = vpop.f32.mrf.mxu1 }
  0xf7   :  { %v1725_v8 = vpop.f32.mrf.mxu0  ;;  %v1727_v9 = vpop.f32.mrf.mxu1 }
  0xf8   :  { %v455_v1 = vmax.f32 %v1725_v8, %v1727_v9 }
  0xf9   :  { %v1189_v10 = vpop.f32.mrf.mxu0  ;;  %v1241_v11 = vpop.f32.mrf.mxu1 }
  0xfb   :  { %v1731_v12 = vpop.f32.mrf.mxu0  ;;  %v1733_v13 = vpop.f32.mrf.mxu1 }
  0xfc   :  { %v456_v14 = vmax.f32 %v1731_v12, %v1733_v13 }
  0xfd   :  { %v1192_v15 = vpop.f32.mrf.mxu0  ;;  %v1244_v16 = vpop.f32.mrf.mxu1 }
  0xff   :  { %v1737_v17 = vpop.f32.mrf.mxu0  ;;  %v1739_v18 = vpop.f32.mrf.mxu1 }
 0x100   :  { %v457_v19 = vmax.f32 %v1737_v17, %v1739_v18 }
 0x101   :  { %v1193_v20 = vpop.f32.mrf.mxu0  ;;  %v1245_v21 = vpop.f32.mrf.mxu1 }
 0x103   :  { %v1743_v22 = vpop.f32.mrf.mxu0  ;;  %v1745_v23 = vpop.f32.mrf.mxu1 }
 0x104   :  { %v458_v24 = vmax.f32 %v1743_v22, %v1745_v23 }
 0x105   :  { %v1196_v25 = vpop.f32.mrf.mxu0  ;;  %v1248_v26 = vpop.f32.mrf.mxu1 }
 0x107   :  { %v1749_v27 = vpop.f32.mrf.mxu0  ;;  %v1751_v28 = vpop.f32.mrf.mxu1 }
 0x108   :  { %v459_v29 = vmax.f32 %v1749_v27, %v1751_v28 }
 0x109   :  { %v1197_v30 = vpop.f32.mrf.mxu0  ;;  %v1249_v31 = vpop.f32.mrf.mxu1 }
 0x10b   :  { %v1755_v32 = vpop.f32.mrf.mxu0  ;;  %v1757_v33 = vpop.f32.mrf.mxu1 }
 0x10c   :  { %v460_v34 = vmax.f32 %v1755_v32, %v1757_v33 }
 0x10d   :  { %v1200_v35 = vpop.f32.mrf.mxu0  ;;  %v1252_v36 = vpop.f32.mrf.mxu1 }
 0x10f   :  { %v1761_v37 = vpop.f32.mrf.mxu0  ;;  %v1763_v38 = vpop.f32.mrf.mxu1 }
 0x110   :  { %v461_v39 = vmax.f32 %v1761_v37, %v1763_v38 }
 0x111   :  { %v1201_v40 = vpop.f32.mrf.mxu0  ;;  %v1253_v41 = vpop.f32.mrf.mxu1 }
 0x113   :  { %v1767_v42 = vpop.f32.mrf.mxu0  ;;  %v1769_v43 = vpop.f32.mrf.mxu1 }
 0x114   :  { %v462_v44 = vmax.f32 %v1767_v42, %v1769_v43 }
 0x115   :  { %v1204_v45 = vpop.f32.mrf.mxu0  ;;  %v1256_v46 = vpop.f32.mrf.mxu1 }
 0x117   :  { %v1773_v47 = vpop.f32.mrf.mxu0  ;;  %v1775_v48 = vpop.f32.mrf.mxu1 }
 0x118   :  { %v463_v49 = vmax.f32 %v1773_v47, %v1775_v48 }
 0x119   :  { %v1205_v50 = vpop.f32.mrf.mxu0  ;;  %v1257_v51 = vpop.f32.mrf.mxu1 }
 0x11b   :  { %v1779_v52 = vpop.f32.mrf.mxu0  ;;  %v1781_v53 = vpop.f32.mrf.mxu1 }
 0x11d   :  { %v1208_v55 = vpop.f32.mrf.mxu0  ;;  %v1260_v56 = vpop.f32.mrf.mxu1 }
 0x11f   :  { %v1785_v57 = vpop.f32.mrf.mxu0  ;;  %v1787_v58 = vpop.f32.mrf.mxu1 }
 0x121   :  { %v1209_v60 = vpop.f32.mrf.mxu0  ;;  %v1261_v61 = vpop.f32.mrf.mxu1 }
 0x123   :  { %v1791_v62 = vpop.f32.mrf.mxu0  ;;  %v1793_v63 = vpop.f32.mrf.mxu1 }
 0x125   :  { %v1212_v2 = vpop.f32.mrf.mxu0  ;;  %v1264_v6 = vpop.f32.mrf.mxu1 }
 0x127   :  { %v1797_v7 = vpop.f32.mrf.mxu0  ;;  %v1799_v10 = vpop.f32.mrf.mxu1 }
 0x129   :  { %v1213_v15 = vpop.f32.mrf.mxu0  ;;  %v1265_v16 = vpop.f32.mrf.mxu1 }
 0x12b   :  { %v1803_v20 = vpop.f32.mrf.mxu0  ;;  %v1805_v21 = vpop.f32.mrf.mxu1 }
 0x12d   :  { %v1216_v26 = vpop.f32.mrf.mxu0  ;;  %v1268_v30 = vpop.f32.mrf.mxu1 }
 0x12f   :  { %v1809_v31 = vpop.f32.mrf.mxu0  ;;  %v1811_v35 = vpop.f32.mrf.mxu1 }
 0x131   :  { %v1217_v40 = vpop.f32.mrf.mxu0  ;;  %v1269_v41 = vpop.f32.mrf.mxu1 }
 0x133   :  { %v1815_v45 = vpop.f32.mrf.mxu0  ;;  %v1817_v46 = vpop.f32.mrf.mxu1 }
 0x135   :  { %v1220_v51 = vpop.f32.mrf.mxu0  ;;  %v1272_v55 = vpop.f32.mrf.mxu1 }
 0x136   :  { %v903_v51 = vpop.permute.xlu0 %902 }
 0x137   :  { %v1821_v56 = vpop.f32.mrf.mxu0  ;;  %v1823_v60 = vpop.f32.mrf.mxu1 }
 0x139   :  { %v1221_v2 = vpop.f32.mrf.mxu0  ;;  %v1273_v6 = vpop.f32.mrf.mxu1 }
 0x13a   :  { %v908_v54 = vpop.permute.xlu0 %907 }
 0x13b   :  { %v579_v15 = vpop.f32.mrf.mxu0  ;;  %v775_v16 = vpop.f32.mrf.mxu1 }
 0x13c   :  { %v650_v26 = vmax.f32 %v454_v5, %v579_v15 }
 0x13d   :  { %v1292_v30 = vpop.f32.mrf.mxu0  ;;  %v1344_v40 = vpop.f32.mrf.mxu1 }
 0x13e   :  { %v846_v41 = vmax.f32 %v650_v26, %v775_v16  ;;  %v913_v30 = vpop.permute.xlu1 %912  ;;  %v923_v18 = vpop.permute.xlu0 %922 }
 0x13f   :  { %v582_v55 = vpop.f32.mrf.mxu0  ;;  %v778_v50 = vpop.f32.mrf.mxu1 }
 0x140   :  { %v651_v36 = vmax.f32 %v455_v1, %v582_v55  ;;  %v864_v2 = vmax.f32 %v846_v41, 0.0 }
 0x141   :  { %v1293_v25 = vpop.f32.mrf.mxu0  ;;  %v1345_v61 = vpop.f32.mrf.mxu1 }
 0x142   :  { %v847_v6 = vmax.f32 %v651_v36, %v778_v50  ;;  %v990_v15 = vmul.f32 %v903_v51, %v864_v2  ;;  %v918_v51 = vpop.permute.xlu1 %917  ;;  %v933_v28 = vpop.permute.xlu0 %932 }
 0x143   :  { %v587_v11 = vpop.f32.mrf.mxu0  ;;  %v783_v0 = vpop.f32.mrf.mxu1 }
 0x144   :  { %v865_v59 = vmax.f32 %v847_v6, 0.0  ;;  %v652_v3 = vmax.f32 %v456_v14, %v587_v11 }
 0x145   :  { %v1296_v4 = vpop.f32.mrf.mxu0  ;;  %v1348_v5 = vpop.f32.mrf.mxu1 }
 0x146   :  { %v991_v16 = vmul.f32 %v908_v54, %v865_v59  ;;  %v848_v26 = vmax.f32 %v652_v3, %v783_v0  ;;  %v943_v38 = vpop.permute.xlu0 %942 }
 0x147   :  { %v590_v8 = vpop.f32.mrf.mxu0  ;;  %v786_v9 = vpop.f32.mrf.mxu1 }
 0x148   :  { %v1008_v1 = vadd.f32 %v991_v16, %v990_v15  ;;  %v866_v25 = vmax.f32 %v848_v26, 0.0  ;;  %v653_v36 = vmax.f32 %v457_v19, %v590_v8 }
 0x149   :  { %v1297_v50 = vpop.f32.mrf.mxu0  ;;  %v1349_v61 = vpop.f32.mrf.mxu1 }
 0x14a   :  { %v992_v40 = vmul.f32 %v913_v30, %v866_v25  ;;  %v849_v41 = vmax.f32 %v653_v36, %v786_v9  ;;  %v953_v48 = vpop.permute.xlu0 %952 }
 0x14b   :  { %v595_v12 = vpop.f32.mrf.mxu0  ;;  %v791_v13 = vpop.f32.mrf.mxu1 }
 0x14c   :  { %v1009_v14 = vadd.f32 %v1008_v1, %v992_v40  ;;  %v867_v11 = vmax.f32 %v849_v41, 0.0  ;;  %v654_v54 = vmax.f32 %v458_v24, %v595_v12  ;;  %v928_v24 = vpop.permute.xlu1 %927 }
 0x14d   :  { %v1300_v59 = vpop.f32.mrf.mxu0  ;;  %v1352_v0 = vpop.f32.mrf.mxu1 }
 0x14e   :  { %v993_v55 = vmul.f32 %v918_v51, %v867_v11  ;;  %v850_v2 = vmax.f32 %v654_v54, %v791_v13 }
 0x14f   :  { %v598_v6 = vpop.f32.mrf.mxu0  ;;  %v794_v17 = vpop.f32.mrf.mxu1 }
 0x150   :  { %v1010_v19 = vadd.f32 %v1009_v14, %v993_v55  ;;  %v868_v3 = vmax.f32 %v850_v2, 0.0  ;;  %v655_v4 = vmax.f32 %v459_v29, %v598_v6  ;;  %v938_v33 = vpop.permute.xlu1 %937 }
 0x151   :  { %v1301_v5 = vpop.f32.mrf.mxu0  ;;  %v1353_v15 = vpop.f32.mrf.mxu1 }
 0x152   :  { %v994_v16 = vmul.f32 %v923_v18, %v868_v3  ;;  %v851_v26 = vmax.f32 %v655_v4, %v794_v17 }
 0x153   :  { %v603_v30 = vpop.f32.mrf.mxu0  ;;  %v799_v22 = vpop.f32.mrf.mxu1 }
 0x154   :  { %v1011_v23 = vadd.f32 %v1010_v19, %v994_v16  ;;  %v869_v8 = vmax.f32 %v851_v26, 0.0  ;;  %v656_v9 = vmax.f32 %v460_v34, %v603_v30  ;;  %v948_v43 = vpop.permute.xlu1 %947  ;;  %v1889_v30 = vmax.f32 %v1779_v52, %v1781_v53 }
 0x155   :  { %v1304_v1 = vpop.f32.mrf.mxu0  ;;  %v1356_v25 = vpop.f32.mrf.mxu1 }
 0x156   :  { %v995_v36 = vmul.f32 %v928_v24, %v869_v8  ;;  %v852_v50 = vmax.f32 %v656_v9, %v799_v22 }
 0x157   :  { %v606_v61 = vpop.f32.mrf.mxu0  ;;  %v802_v27 = vpop.f32.mrf.mxu1 }
 0x158   :  { %v1012_v29 = vadd.f32 %v1011_v23, %v995_v36  ;;  %v870_v40 = vmax.f32 %v852_v50, 0.0  ;;  %v657_v41 = vmax.f32 %v461_v39, %v606_v61  ;;  %v1890_v36 = vmax.f32 %v1785_v57, %v1787_v58  ;;  %v958_v53 = vpop.permute.xlu1 %957  ;;  %v963_v58 = vpop.permute.xlu0 %962 }
 0x159   :  { %v1305_v12 = vpop.f32.mrf.mxu0  ;;  %v1357_v13 = vpop.f32.mrf.mxu1 }
 0x15a   :  { %v996_v14 = vmul.f32 %v933_v28, %v870_v40  ;;  %v853_v11 = vmax.f32 %v657_v41, %v802_v27  ;;  %v1891_v13 = vmax.f32 %v1791_v62, %v1793_v63 }
 0x15b   :  { %v611_v51 = vpop.f32.mrf.mxu0  ;;  %v807_v32 = vpop.f32.mrf.mxu1 }
 0x15c   :  { %v1013_v34 = vadd.f32 %v1012_v29, %v996_v14  ;;  %v871_v54 = vmax.f32 %v853_v11, 0.0  ;;  %v658_v59 = vmax.f32 %v462_v44, %v611_v51  ;;  %v968_v63 = vpop.permute.xlu1 %967 }
 0x15d   :  { %v1308_v0 = vpop.f32.mrf.mxu0  ;;  %v1360_v55 = vpop.f32.mrf.mxu1 }
 0x15e   :  { %v997_v2 = vmul.f32 %v938_v33, %v871_v54  ;;  %v854_v6 = vmax.f32 %v658_v59, %v807_v32  ;;  %v1892_v0 = vmax.f32 %v1797_v7, %v1799_v10  ;;  %v973_v10 = vpop.permute.xlu0 %972 }
 0x15f   :  { %v614_v17 = vpop.f32.mrf.mxu0  ;;  %v810_v37 = vpop.f32.mrf.mxu1 }
 0x160   :  { %v1014_v39 = vadd.f32 %v1013_v34, %v997_v2  ;;  %v872_v18 = vmax.f32 %v854_v6, 0.0  ;;  %v659_v19 = vmax.f32 %v463_v49, %v614_v17 }
 0x161   :  { %v1309_v3 = vpop.f32.mrf.mxu0  ;;  %v1361_v4 = vpop.f32.mrf.mxu1 }
 0x162   :  { %v998_v5 = vmul.f32 %v943_v38, %v872_v18  ;;  %v855_v15 = vmax.f32 %v659_v19, %v810_v37  ;;  %v1893_v19 = vmax.f32 %v1803_v20, %v1805_v21  ;;  %v978_v21 = vpop.permute.xlu1 %977 }
 0x163   :  { %v619_v16 = vpop.f32.mrf.mxu0  ;;  %v815_v42 = vpop.f32.mrf.mxu1 }
 0x164   :  { %v1015_v44 = vadd.f32 %v1014_v39, %v998_v5  ;;  %v873_v26 = vmax.f32 %v855_v15, 0.0  ;;  %v660_v22 = vmax.f32 %v1889_v30, %v619_v16 }
 0x165   :  { %v1312_v23 = vpop.f32.mrf.mxu0  ;;  %v1364_v24 = vpop.f32.mrf.mxu1 }
 0x166   :  { %v999_v8 = vmul.f32 %v948_v43, %v873_v26  ;;  %v856_v9 = vmax.f32 %v660_v22, %v815_v42  ;;  %v1894_v26 = vmax.f32 %v1809_v31, %v1811_v35  ;;  %v983_v35 = vpop.permute.xlu0 %982 }
 0x167   :  { %v622_v1 = vpop.f32.mrf.mxu0  ;;  %v818_v47 = vpop.f32.mrf.mxu1 }
 0x168   :  { %v1016_v49 = vadd.f32 %v1015_v44, %v999_v8  ;;  %v874_v25 = vmax.f32 %v856_v9, 0.0  ;;  %v661_v50 = vmax.f32 %v1890_v36, %v622_v1 }
 0x169   :  { %v1313_v61 = vpop.f32.mrf.mxu0  ;;  %v1365_v27 = vpop.f32.mrf.mxu1 }
 0x16a   :  { %v1000_v28 = vmul.f32 %v953_v48, %v874_v25  ;;  %v857_v29 = vmax.f32 %v661_v50, %v818_v47  ;;  %v1895_v48 = vmax.f32 %v1815_v45, %v1817_v46  ;;  %v988_v46 = vpop.permute.xlu1 %987 }
 0x16b   :  { %v627_v40 = vpop.f32.mrf.mxu0  ;;  %v823_v52 = vpop.f32.mrf.mxu1 }
 0x16c   :  { %v1017_v41 = vadd.f32 %v1016_v49, %v1000_v28  ;;  %v875_v12 = vmax.f32 %v857_v29, 0.0  ;;  %v662_v14 = vmax.f32 %v1891_v13, %v627_v40  ;;  %v1896_v40 = vmax.f32 %v1821_v56, %v1823_v60 }
 0x16d   :  { %v1316_v11 = vpop.f32.mrf.mxu0  ;;  %v1368_v51 = vpop.f32.mrf.mxu1 }
 0x16e   :  { %v1001_v32 = vmul.f32 %v958_v53, %v875_v12  ;;  %v858_v33 = vmax.f32 %v662_v14, %v823_v52  ;;  %v1037_v51 = vlaneseq }
 0x16f   :  { %v630_v34 = vpop.f32.mrf.mxu0  ;;  %v826_v57 = vpop.f32.mrf.mxu1 }
 0x170   :  { %v1018_v54 = vadd.f32 %v1017_v41, %v1001_v32  ;;  %v876_v59 = vmax.f32 %v858_v33, 0.0  ;;  %v663_v55 = vmax.f32 %v1892_v0, %v630_v34  ;;  %v1038_v34 = vshrl.u32 %v1037_v51, 7  ;;  %v1035_v0 = vpop.permute.xlu0 %1034 }
 0x171   :  { %v1317_v2 = vpop.f32.mrf.mxu0  ;;  %v1369_v6 = vpop.f32.mrf.mxu1 }
 0x172   :  { %v1002_v17 = vmul.f32 %v963_v58, %v876_v59  ;;  %v859_v37 = vmax.f32 %v663_v55, %v826_v57 }
 0x173   :  { %v635_v38 = vpop.f32.mrf.mxu0  ;;  %v831_v62 = vpop.f32.mrf.mxu1 }
 0x174   :  { %v1019_v39 = vadd.f32 %v1018_v54, %v1002_v17  ;;  %v877_v18 = vmax.f32 %v859_v37, 0.0  ;;  %v664_v3 = vmax.f32 %v1893_v19, %v635_v38  ;;  %v1039_v54 = vsub.s32 0, %v1038_v34 }
 0x175   :  { %v1320_v4 = vpop.f32.mrf.mxu0  ;;  %v1372_v5 = vpop.f32.mrf.mxu1 }
 0x176   :  { %v1003_v15 = vmul.f32 %v968_v63, %v877_v18  ;;  %v860_v16 = vmax.f32 %v664_v3, %v831_v62  ;;  %v1040_v56 = vrot.slane %v1035_v0, %v1039_v54 }
 0x177   :  { %v638_v42 = vpop.f32.mrf.mxu0  ;;  %v834_v7 = vpop.f32.mrf.mxu1 }
 0x178   :  { %v1020_v43 = vadd.f32 %v1019_v39, %v1003_v15  ;;  %v878_v44 = vmax.f32 %v860_v16, 0.0  ;;  %v665_v30 = vmax.f32 %v1894_v26, %v638_v42 }
 0x179   :  { %v1321_v22 = vpop.f32.mrf.mxu0  ;;  %v1373_v23 = vpop.f32.mrf.mxu1 }
 0x17a   :  { %v1004_v24 = vmul.f32 %v973_v10, %v878_v44  ;;  %v861_v8 = vmax.f32 %v665_v30, %v834_v7 }
 0x17b   :  { %v643_v9 = vpop.f32.mrf.mxu0  ;;  %v839_v20 = vpop.f32.mrf.mxu1 }
 0x17c   :  { %v1021_v1 = vadd.f32 %v1020_v43, %v1004_v24  ;;  %v879_v47 = vmax.f32 %v861_v8, 0.0  ;;  %v666_v49 = vmax.f32 %v1895_v48, %v643_v9 }
 0x17d   :  { %v1324_v25 = vpop.f32.mrf.mxu0  ;;  %v1376_v36 = vpop.f32.mrf.mxu1 }
 0x17e   :  { %v1005_v50 = vmul.f32 %v978_v21, %v879_v47  ;;  %v862_v61 = vmax.f32 %v666_v49, %v839_v20 }
 0x17f   :  { %v646_v27 = vpop.f32.mrf.mxu0  ;;  %v842_v31 = vpop.f32.mrf.mxu1 }
 0x180   :  { %v1022_v28 = vadd.f32 %v1021_v1, %v1005_v50  ;;  %v880_v29 = vmax.f32 %v862_v61, 0.0  ;;  %v667_v52 = vmax.f32 %v1896_v40, %v646_v27 }
 0x181   :  { %v1325_v53 = vpop.f32.mrf.mxu0  ;;  %v1377_v41 = vpop.f32.mrf.mxu1 }
 0x182   :  { %v1006_v12 = vmul.f32 %v983_v35, %v880_v29  ;;  %v863_v13 = vmax.f32 %v667_v52, %v842_v31 }
 0x184   :  { %v1023_v14 = vadd.f32 %v1022_v28, %v1006_v12  ;;  %v881_v45 = vmax.f32 %v863_v13, 0.0 }
 0x186   :  { %v1007_v11 = vmul.f32 %v988_v46, %v881_v45 }
 0x188   :  { %v1024_v32 = vadd.f32 %v1023_v14, %v1007_v11 }
 0x18a   :  { %v1025_v33 = vrot.slane %v1024_v32, 4 }
 0x18c   :  { %v1026_v57 = vadd.f32 %v1025_v33, %v1024_v32 }
 0x18e   :  { %v1027_v58 = vrot.slane %v1026_v57, 2 }
 0x190   :  { %v1028_v59 = vadd.f32 %v1027_v58, %v1026_v57 }
 0x192   :  { %v1029_v55 = vrot.slane %v1028_v59, 1 }
 0x194   :  { %v1030_v60 = vadd.f32 %v1029_v55, %v1028_v59 }
 0x196   :  { %v1041_v2 = vadd.f32 %v1040_v56, %v1030_v60 }
 0x198   :  { %1042 = vst [vmem:[#allocation6] sm:$0x1] %v1041_v2 }
 0x199   :  { %1462 = shalt.err (!%p1459_p9)
}
 0x19a   :  { %1052 = dma.vmem_to_hbm [thread:$0]  %s1050_s18, 16, %s1888_s4, [#allocation5]  }
 0x19b   :  { %1473 = dma.done.wait [#allocation5], 16  }
 0x19c   :  { %1474 = vsyncadd [#allocation5], 4294967280 }
 0x19d   :  { %1056 = vsyncpa [#allocation4], 1 }
 0x19e   :  { %1057 = vsyncpa [#allocation5], 1 }

</bundles_post_ra>
